<compile_context>
chip_gen: v5e
topology: v5e:2x2
jax: 0.10.0
libtpu: 0.0.40
codegen_flags: <defaults>
</compile_context>

<pallas_src>
import functools

import jax
import jax.numpy as jnp
from jax.experimental import pallas as pl
from jax.experimental.pallas import tpu as pltpu


def _conv3x3_kernel(x_ref, w_ref, b_ref, o_ref, *, stride, hout):
    """x_ref: (B_blk, H+2, W*Cin)    H-padded, (W, Cin) flattened on lanes
       w_ref: (3, W*Cin, WC_pad)     per-dy Toeplitz-expanded weights
       b_ref: (1, WC_pad)            bias tiled over Wout (zeros in pad lanes)
       o_ref: (B_blk, Hout, WC_pad)  lane-dense output block"""
    b_blk = x_ref.shape[0]
    wc_pad = o_ref.shape[-1]
    m = b_blk * hout
    span = (hout - 1) * stride + 1

    x = x_ref[...]                                       # (B_blk, H+2, W*Cin)

    def taps(dy):
        rows = x[:, dy:dy + span:stride, :]              # (B_blk, Hout, W*Cin)
        return rows.reshape(m, x.shape[-1])              # (M, W*Cin)

    # One MXU matmul per kernel row dy; dx taps + Cin + W-padding live in the
    # contraction dim via the Toeplitz-expanded weights.
    acc = jnp.dot(taps(0), w_ref[0], preferred_element_type=jnp.float32)
    acc = acc + jnp.dot(taps(1), w_ref[1], preferred_element_type=jnp.float32)
    acc = acc + jnp.dot(taps(2), w_ref[2], preferred_element_type=jnp.float32)
    acc = acc + b_ref[...].astype(jnp.float32)           # (1, WC_pad) broadcast
    o_ref[...] = acc.reshape(b_blk, hout, wc_pad).astype(o_ref.dtype)


def conv2d3x3(x_nchw, weight_oihw, bias, *, downsample=False):
    """Equivalent of Conv2d3x3.forward: nn.Conv2d(kernel=3, padding=1,
    stride=2 if downsample else 1). PyTorch NCHW/OIHW layouts in/out."""
    stride = 2 if downsample else 1
    n, cin, h, w = x_nchw.shape
    cout = weight_oihw.shape[0]
    hout = (h + 2 - 3) // stride + 1
    wout = (w + 2 - 3) // stride + 1
    wc = wout * cout
    wc_pad = max(128, ((wc + 127) // 128) * 128)         # lane-dense output
    dtype = x_nchw.dtype
    itemsize = jnp.dtype(dtype).itemsize

    # --- Static weight prep (per layer / input shape; hoisted by jit).
    # Toeplitz-fold the 3 dx taps, Cin and the width padding into one
    # contraction matrix per kernel row dy:
    #   t[dy, w_in*Cin + c, w_out*Cout + o] =
    #       sum_dx [w_in == w_out*stride + dx - 1] * k[dy, dx, c, o]
    k = jnp.transpose(weight_oihw, (2, 3, 1, 0))          # (3, 3, Cin, Cout)
    w_in = jnp.arange(w)
    w_out = jnp.arange(wout)
    dx = jnp.arange(3)
    sel = (w_in[None, None, :] ==
           w_out[:, None, None] * stride + dx[None, :, None] - 1)
    sel = sel.astype(dtype)                               # (Wout, 3, W)
    # sel is exactly 0/1, so this expansion is bit-exact at HIGHEST precision.
    t = jnp.einsum("wxp,yxco->ypcwo", sel, k,
                   precision=jax.lax.Precision.HIGHEST)   # (3, W, Cin, Wout, Cout)
    t = t.reshape(3, w * cin, wc)
    t = jnp.pad(t, ((0, 0), (0, 0), (0, wc_pad - wc)))
    b_tiled = jnp.pad(jnp.tile(bias, wout), (0, wc_pad - wc)).reshape(1, wc_pad)

    # --- Pick B_blk: fill the MXU M dimension, stay inside scoped VMEM
    # (budget chosen with headroom for v7x; blocks are double-buffered).
    target_m = 128
    b_blk = max(1, min(n, -(-target_m // hout)))

    def vmem_bytes(b):
        x_blk = b * (h + 2) * w * cin * itemsize
        o_blk = b * hout * wc_pad * itemsize
        w_res = 3 * w * cin * wc_pad * itemsize
        return 2 * (x_blk + o_blk + w_res) + 2 * wc_pad * itemsize

    vmem_budget = 24 * 1024 * 1024
    while b_blk > 1 and vmem_bytes(b_blk) > vmem_budget:
        b_blk -= 1
    n_pad = -(-n // b_blk) * b_blk

    # --- Activation glue: NCHW -> NHWC, pad H only (W pad folded into t),
    # flatten (W, Cin) onto the lane axis, pad batch to a multiple of B_blk.
    x_nhwc = jnp.transpose(x_nchw, (0, 2, 3, 1))
    x_hpad = jnp.pad(x_nhwc, ((0, n_pad - n), (1, 1), (0, 0), (0, 0)))
    x_flat = x_hpad.reshape(n_pad, h + 2, w * cin)

    cost = pl.CostEstimate(
        flops=2 * n * hout * wout * cout * cin * 9,
        transcendentals=0,
        bytes_accessed=(n * (h + 2) * w * cin + 3 * w * cin * wc_pad
                        + wc_pad + n * hout * wc_pad) * itemsize)

    out_flat = pl.pallas_call(
        functools.partial(_conv3x3_kernel, stride=stride, hout=hout),
        out_shape=jax.ShapeDtypeStruct((n_pad, hout, wc_pad), dtype),
        grid=(n_pad // b_blk,),
        in_specs=[
            pl.BlockSpec((b_blk, h + 2, w * cin), lambda i: (i, 0, 0)),
            pl.BlockSpec((3, w * cin, wc_pad), lambda i: (0, 0, 0)),
            pl.BlockSpec((1, wc_pad), lambda i: (0, 0)),
        ],
        out_specs=pl.BlockSpec((b_blk, hout, wc_pad), lambda i: (i, 0, 0)),
        compiler_params=pltpu.CompilerParams(
            dimension_semantics=("parallel",),
            vmem_limit_bytes=32 * 1024 * 1024),
        cost_estimate=cost,
    )(x_flat, t, b_tiled)

    out = out_flat[:n, :, :wc].reshape(n, hout, wout, cout)
    return jnp.transpose(out, (0, 3, 1, 2))               # back to NCHW


def _reference(x_nchw, weight_oihw, bias, *, downsample=False):
    stride = 2 if downsample else 1
    out = jax.lax.conv_general_dilated(
        x_nchw, weight_oihw,
        window_strides=(stride, stride),
        padding=((1, 1), (1, 1)),
        dimension_numbers=("NCHW", "OIHW", "NCHW"))
    return out + bias.reshape(1, -1, 1, 1)


if __name__ == "__main__":
    key = jax.random.PRNGKey(0)
    k_x, k_w, k_b = jax.random.split(key, 3)

    N, Cin, H, W = 2, 4, 16, 16
    Cout = 8

    x = jax.random.normal(k_x, (N, Cin, H, W), jnp.float32)
    # Deterministic Conv2d-style init (kaiming-uniform-ish bound).
    fan_in = Cin * 3 * 3
    bound = 1.0 / (fan_in ** 0.5)
    weight = jax.random.uniform(k_w, (Cout, Cin, 3, 3), jnp.float32,
                                minval=-bound, maxval=bound)
    bias = jax.random.uniform(k_b, (Cout,), jnp.float32,
                              minval=-bound, maxval=bound)

    ok = True
    for downsample in (False, True):
        fn = jax.jit(functools.partial(conv2d3x3, downsample=downsample))
        out = fn(x, weight, bias)
        jax.block_until_ready(out)
        ref = _reference(x, weight, bias, downsample=downsample)
        if out.shape != ref.shape or not jnp.allclose(out, ref,
                                                      atol=1e-4, rtol=1e-4):
            ok = False

    print("KERNEL_OK" if ok else "KERNEL_MISMATCH")
</pallas_src>

<mosaic_0001>
module attributes {stable_mosaic.version = 11 : i64} {
  func.func @_conv3x3_kernel(%arg0: i32, %arg1: memref<2x18x64xf32, #tpu.memory_space<vmem>>, %arg2: memref<3x64x128xf32, #tpu.memory_space<vmem>>, %arg3: memref<1x128xf32, #tpu.memory_space<vmem>>, %arg4: memref<2x16x128xf32, #tpu.memory_space<vmem>>) attributes {dimension_semantics = [#tpu.dimension_semantics<parallel>], iteration_bounds = array<i64: 1>, scalar_prefetch = 0 : i64, scratch_operands = 0 : i64, tpu.core_type = #tpu.core_type<tc>, window_params = [{transform_indices = @transform_0, window_bounds = array<i64: 2, 18, 64>}, {pipeline_mode = #tpu.pipeline_mode<synchronous>, transform_indices = @transform_1, window_bounds = array<i64: 3, 64, 128>}, {pipeline_mode = #tpu.pipeline_mode<synchronous>, transform_indices = @transform_2, window_bounds = array<i64: 1, 128>}, {transform_indices = @transform_3, window_bounds = array<i64: 2, 16, 128>}]} {
    %c0 = arith.constant 0 : index
    %c0_0 = arith.constant 0 : index
    %c0_1 = arith.constant 0 : index
    %0 = vector.load %arg1[%c0, %c0_0, %c0_1] : memref<2x18x64xf32, #tpu.memory_space<vmem>>, vector<2x18x64xf32>
    %1 = vector.extract_strided_slice %0 {offsets = [0, 0, 0], sizes = [2, 16, 64], strides = [1, 1, 1]} : vector<2x18x64xf32> to vector<2x16x64xf32>
    %2 = vector.shape_cast %1 : vector<2x16x64xf32> to vector<32x64xf32>
    %c0_2 = arith.constant 0 : index
    %c0_3 = arith.constant 0 : index
    %c0_4 = arith.constant 0 : index
    %3 = vector.load %arg2[%c0_2, %c0_3, %c0_4] : memref<3x64x128xf32, #tpu.memory_space<vmem>>, vector<1x64x128xf32>
    %4 = vector.shape_cast %3 : vector<1x64x128xf32> to vector<64x128xf32>
    %cst = arith.constant dense<0.000000e+00> : vector<32x128xf32>
    %5 = tpu.matmul %2, %4, %cst {dimension_numbers = #tpu.dot_dimension_numbers<[1], [0], [0], [1], [0, 0, 1, 1], [], []>} : vector<32x64xf32>, vector<64x128xf32>, vector<32x128xf32> -> vector<32x128xf32>
    %6 = vector.extract_strided_slice %0 {offsets = [0, 1, 0], sizes = [2, 16, 64], strides = [1, 1, 1]} : vector<2x18x64xf32> to vector<2x16x64xf32>
    %7 = vector.shape_cast %6 : vector<2x16x64xf32> to vector<32x64xf32>
    %c1 = arith.constant 1 : index
    %c0_5 = arith.constant 0 : index
    %c0_6 = arith.constant 0 : index
    %8 = vector.load %arg2[%c1, %c0_5, %c0_6] : memref<3x64x128xf32, #tpu.memory_space<vmem>>, vector<1x64x128xf32>
    %9 = vector.shape_cast %8 : vector<1x64x128xf32> to vector<64x128xf32>
    %cst_7 = arith.constant dense<0.000000e+00> : vector<32x128xf32>
    %10 = tpu.matmul %7, %9, %cst_7 {dimension_numbers = #tpu.dot_dimension_numbers<[1], [0], [0], [1], [0, 0, 1, 1], [], []>} : vector<32x64xf32>, vector<64x128xf32>, vector<32x128xf32> -> vector<32x128xf32>
    %11 = arith.addf %5, %10 : vector<32x128xf32>
    %12 = vector.extract_strided_slice %0 {offsets = [0, 2, 0], sizes = [2, 16, 64], strides = [1, 1, 1]} : vector<2x18x64xf32> to vector<2x16x64xf32>
    %13 = vector.shape_cast %12 : vector<2x16x64xf32> to vector<32x64xf32>
    %c2 = arith.constant 2 : index
    %c0_8 = arith.constant 0 : index
    %c0_9 = arith.constant 0 : index
    %14 = vector.load %arg2[%c2, %c0_8, %c0_9] : memref<3x64x128xf32, #tpu.memory_space<vmem>>, vector<1x64x128xf32>
    %15 = vector.shape_cast %14 : vector<1x64x128xf32> to vector<64x128xf32>
    %cst_10 = arith.constant dense<0.000000e+00> : vector<32x128xf32>
    %16 = tpu.matmul %13, %15, %cst_10 {dimension_numbers = #tpu.dot_dimension_numbers<[1], [0], [0], [1], [0, 0, 1, 1], [], []>} : vector<32x64xf32>, vector<64x128xf32>, vector<32x128xf32> -> vector<32x128xf32>
    %17 = arith.addf %11, %16 : vector<32x128xf32>
    %c0_11 = arith.constant 0 : index
    %c0_12 = arith.constant 0 : index
    %18 = vector.load %arg3[%c0_11, %c0_12] : memref<1x128xf32, #tpu.memory_space<vmem>>, vector<1x128xf32>
    %19 = vector.broadcast %18 : vector<1x128xf32> to vector<32x128xf32>
    %20 = arith.addf %17, %19 : vector<32x128xf32>
    %21 = vector.shape_cast %20 : vector<32x128xf32> to vector<2x16x128xf32>
    %c0_13 = arith.constant 0 : index
    %c0_14 = arith.constant 0 : index
    %c0_15 = arith.constant 0 : index
    %22 = vector.load %arg4[%c0_13, %c0_14, %c0_15] : memref<2x16x128xf32, #tpu.memory_space<vmem>>, vector<2x16x128xf32>
    tpu.vector_store %arg4[%c0_13, %c0_14, %c0_15], %21 {strides = array<i32>} : memref<2x16x128xf32, #tpu.memory_space<vmem>>, vector<2x16x128xf32>,
    return
  }
  func.func @transform_0(%arg0: i32) -> (i32, i32, i32) {
    %c0_i32 = arith.constant 0 : i32
    %c0_i32_0 = arith.constant 0 : i32
    %c0_i32_1 = arith.constant 0 : i32
    return %arg0, %c0_i32, %c0_i32_0 : i32, i32, i32
  }
  func.func @transform_1(%arg0: i32) -> (i32, i32, i32) {
    %c0_i32 = arith.constant 0 : i32
    %c0_i32_0 = arith.constant 0 : i32
    %c0_i32_1 = arith.constant 0 : i32
    %c0_i32_2 = arith.constant 0 : i32
    return %c0_i32, %c0_i32_0, %c0_i32_1 : i32, i32, i32
  }
  func.func @transform_2(%arg0: i32) -> (i32, i32) {
    %c0_i32 = arith.constant 0 : i32
    %c0_i32_0 = arith.constant 0 : i32
    %c0_i32_1 = arith.constant 0 : i32
    return %c0_i32, %c0_i32_0 : i32, i32
  }
  func.func @transform_3(%arg0: i32) -> (i32, i32, i32) {
    %c0_i32 = arith.constant 0 : i32
    %c0_i32_0 = arith.constant 0 : i32
    %c0_i32_1 = arith.constant 0 : i32
    return %arg0, %c0_i32, %c0_i32_0 : i32, i32, i32
  }
}

</mosaic_0001>

<bundles_post_ra>
// kernel: tile.8
= control target key start
LH: loop header
LB: loop body
LE: loop exit
PB: predicated region body
PF: predicated region fallthrough
CT: control target
= control target key end

     0   :  { %s28_s0 = inlined_call_operand.vmem [shape: f32[8], index: 0, kind: input, shape index: {}]   ;;  %s29_s1 = inlined_call_operand.vmem [shape: f32[16,8], index: 1, kind: output, shape index: {}]  }
   0x1   :  { %v4_v0 = vld [vmem:[%s28_s0] ss:$0 sm:$0xff] }
   0x2   :  { %5 = vst [vmem:[%s29_s1] sm:$0xff] %v4_v0 }
   0x3   :  { %8 = vst [vmem:[%s29_s1 + $0x8] sm:$0xff] %v4_v0 }

// kernel: conv2d3x3.1
= control target key start
LH: loop header
LB: loop body
LE: loop exit
PB: predicated region body
PF: predicated region fallthrough
CT: control target
= control target key end

     0   :  { %vm129_vm0 = vcmask 1045504   ;;  %vm34_vm1 = vcmask 1046528   ;;  %vm54_vm2 = vcmask 523264   ;;  %s388_s1 = inlined_call_operand.vmem [shape: f32[3,64,128], index: 1, kind: input, shape index: {}]   ;;  %s389_s0 = inlined_call_operand.vmem [shape: f32[2,18,64], index: 0, kind: input, shape index: {}]   ;;  %s390_s2 = inlined_call_operand.vmem [shape: f32[1,128], index: 2, kind: input, shape index: {}]   ;;  %s391_s3 = inlined_call_operand.vmem [shape: f32[2,16,128], index: 3, kind: output, shape index: {}]  }
   0x1   :  { %v229_v0 = vld [vmem:[%s388_s1 + $0xb8] sm:$0xff]  ;;  %v228_v1 = vld [vmem:[%s388_s1 + $0xb0] sm:$0xff]  ;;  %v227_v5 = vld [vmem:[%s388_s1 + $0xa8] sm:$0xff] }
   0x2   :  { %v213_v2 = vld [vmem:[%s388_s1 + $0x78] sm:$0xff]  ;;  %165 = vmatpush.msra.mxu2 %v229_v0  ;;  %v212_v4 = vld [vmem:[%s388_s1 + $0x70] sm:$0xff]  ;;  %v211_v7 = vld [vmem:[%s388_s1 + $0x68] sm:$0xff] }
   0x3   :  { %71 = vmatpush.msra.mxu0 %v213_v2  ;;  %v27_v3 = vld [vmem:[%s388_s1 + $0x38] sm:$0xff]  ;;  %234 = vmatpush.msra.mxu3 %v213_v2  ;;  %v26_v6 = vld [vmem:[%s388_s1 + $0x30] sm:$0xff]  ;;  %v25_v8 = vld [vmem:[%s388_s1 + $0x28] sm:$0xff] }
   0x4   :  { %108 = vmatpush.msra.mxu1 %v27_v3  ;;  %166 = vmatpush.msra.mxu2 %v228_v1  ;;  %v226_v9 = vld [vmem:[%s388_s1 + $0xa0] sm:$0xff]  ;;  %v225_v12 = vld [vmem:[%s388_s1 + $0x98] sm:$0xff]  ;;  %v15_v16 = vld [vmem:[%s389_s0 + $0x8] sm:$0xff] }
   0x5   :  { %72 = vmatpush.msra.mxu0 %v212_v4  ;;  %235 = vmatpush.msra.mxu3 %v212_v4  ;;  %v210_v10 = vld [vmem:[%s388_s1 + $0x60] sm:$0xff]  ;;  %v209_v13 = vld [vmem:[%s388_s1 + $0x58] sm:$0xff]  ;;  %v224_v17 = vld [vmem:[%s388_s1 + $0x90] sm:$0xff]  ;;  %v131_v21 = vrot.slane %v15_v16, 2  ;;  %v36_v26 = vrot.slane %v15_v16, 1 }
   0x6   :  { %109 = vmatpush.msra.mxu1 %v26_v6  ;;  %167 = vmatpush.msra.mxu2 %v227_v5  ;;  %v24_v11 = vld [vmem:[%s388_s1 + $0x20] sm:$0xff]  ;;  %v23_v15 = vld [vmem:[%s388_s1 + $0x18] sm:$0xff]  ;;  %v208_v18 = vld [vmem:[%s388_s1 + $0x50] sm:$0xff] }
   0x7   :  { %73 = vmatpush.msra.mxu0 %v211_v7  ;;  %236 = vmatpush.msra.mxu3 %v211_v7  ;;  %v14_v14 = vld [vmem:[%s389_s0] sm:$0xff]  ;;  %v22_v19 = vld [vmem:[%s388_s1 + $0x10] sm:$0xff]  ;;  %v223_v23 = vld [vmem:[%s388_s1 + $0x88] sm:$0xff] }
   0x8   :  { %110 = vmatpush.msra.mxu1 %v25_v8  ;;  %168 = vmatpush.msra.mxu2 %v226_v9  ;;  %v130_v20 = vrot.slane %v14_v14, 2  ;;  %v16_v22 = vld [vmem:[%s389_s0 + $0x10] sm:$0x3]  ;;  %v207_v24 = vld [vmem:[%s388_s1 + $0x48] sm:$0xff]  ;;  %v35_v25 = vrot.slane %v14_v14, 1  ;;  %v222_v28 = vld [vmem:[%s388_s1 + $0x80] sm:$0xff] }
   0x9   :  { %74 = vmatpush.msra.mxu0 %v210_v10  ;;  %237 = vmatpush.msra.mxu3 %v210_v10  ;;  %v21_v27 = vld [vmem:[%s388_s1 + $0x8] sm:$0xff]  ;;  %v206_v29 = vld [vmem:[%s388_s1 + $0x40] sm:$0xff]  ;;  %v38_v30 = vrot.slane %v16_v22, 1  ;;  %v133_v35 = vrot.slane %v16_v22, 2  ;;  %v17_v36 = vld [vmem:[%s389_s0 + $0x18] sm:$0xff] }
   0xa   :  { %111 = vmatpush.msra.mxu1 %v24_v11  ;;  %169 = vmatpush.msra.mxu2 %v225_v12  ;;  %v132_v31 = vsel %vm129_vm0, %v130_v20, %v131_v21  ;;  %v20_v32 = vld [vmem:[%s388_s1] sm:$0xff]  ;;  %v37_v33 = vsel %vm34_vm1, %v35_v25, %v36_v26  ;;  %v40_v38 = vrot.slane %v17_v36, 1  ;;  %v135_v42 = vrot.slane %v17_v36, 2  ;;  %v19_v44 = vld [vmem:[%s389_s0 + $0x28] sm:$0x3] }
   0xb   :  { %75 = vmatpush.msra.mxu0 %v209_v13  ;;  %238 = vmatpush.msra.mxu3 %v209_v13  ;;  %v39_v34 = vsel %vm34_vm1, %v36_v26, %v38_v30  ;;  %v18_v37 = vld [vmem:[%s389_s0 + $0x20] sm:$0xff]  ;;  %v134_v40 = vsel %vm129_vm0, %v131_v21, %v133_v35  ;;  %v43_v45 = vrot.slane %v19_v44, 1  ;;  %v138_v48 = vrot.slane %v19_v44, 2 }
   0xc   :  { %112 = vmatpush.msra.mxu1 %v23_v15  ;;  %170 = vmatpush.msra.mxu2 %v224_v17  ;;  %v41_v39 = vrot.slane %v18_v37, 1  ;;  %v136_v43 = vrot.slane %v18_v37, 2  ;;  %v242_v53 = vld [vmem:[%s390_s2] ss:$0 sm:$0xff] }
   0xd   :  { %76 = vmatpush.msra.mxu0 %v208_v18  ;;  %239 = vmatpush.msra.mxu3 %v208_v18 }
   0xe   :  { %113 = vmatpush.msra.mxu1 %v22_v19  ;;  %171 = vmatpush.msra.mxu2 %v223_v23  ;;  %v42_v41 = vsel %vm34_vm1, %v40_v38, %v41_v39  ;;  %v137_v46 = vsel %vm129_vm0, %v135_v42, %v136_v43  ;;  %v44_v47 = vsel %vm34_vm1, %v41_v39, %v43_v45 }
   0xf   :  { %77 = vmatpush.msra.mxu0 %v207_v24  ;;  %240 = vmatpush.msra.mxu3 %v207_v24  ;;  %v139_v49 = vsel %vm129_vm0, %v136_v43, %v138_v48 }
  0x10   :  { %114 = vmatpush.msra.mxu1 %v21_v27  ;;  %172 = vmatpush.msra.mxu2 %v222_v28 }
  0x11   :  { %78 = vmatpush.msra.mxu0 %v206_v29  ;;  %230 = vmatmul.msk.f32.vlgmr.msra.gmra.mxu2 %vm54_vm2, %v132_v31 }
  0x12   :  { %115 = vmatpush.msra.mxu1 %v20_v32  ;;  %214 = vmatmul.msk.f32.vlgmr.msra.gmra.mxu0 %vm54_vm2, %v37_v33 }
  0x13   :  { %218 = vmatmul.msk.f32.vlgmr.msra.gmra.mxu1 %vm54_vm2, %v14_v14  ;;  %241 = vmatpush.msra.mxu3 %v206_v29 }
  0x14   :  { %215 = vmatmul.msk.f32.vlgmr.msra.gmra.mxu3 %vm54_vm2, %v39_v34 }
  0x19   :  { %231 = vmatmul.msk.f32.gmra.mxu2 %vm54_vm2, %v134_v40 }
  0x1b   :  { %219 = vmatmul.msk.f32.gmra.mxu1 %vm54_vm2, %v15_v16 }
  0x1c   :  { %216 = vmatmul.msk.f32.gmra.mxu3 %vm54_vm2, %v42_v41 }
  0x21   :  { %232 = vmatmul.msk.f32.gmra.mxu2 %vm54_vm2, %v137_v46 }
  0x23   :  { %220 = vmatmul.msk.f32.gmra.mxu1 %vm54_vm2, %v17_v36 }
  0x24   :  { %217 = vmatmul.msk.f32.gmra.mxu3 %vm54_vm2, %v44_v47 }
  0x29   :  { %233 = vmatmul.msk.f32.gmra.mxu2 %vm54_vm2, %v139_v49 }
  0x2b   :  { %221 = vmatmul.msk.f32.gmra.mxu1 %vm54_vm2, %v18_v37 }
  0x8f   :  { %v80_v50 = vpop.f32.mrf.mxu0 }
  0x90   :  { %v117_v51 = vpop.f32.mrf.mxu1 }
  0x91   :  { %v118_v52 = vadd.f32 %v117_v51, %v80_v50 }
  0x94   :  { %v174_v54 = vpop.f32.mrf.mxu2 }
  0x95   :  { %v186_v55 = vadd.f32 %v174_v54, %v118_v52 }
  0x97   :  { %v194_v56 = vadd.f32 %v242_v53, %v186_v55  ;;  %v83_v57 = vpop.f32.mrf.mxu3 }
  0x98   :  { %v120_v58 = vpop.f32.mrf.mxu1 }
  0x99   :  { %198 = vst [vmem:[%s391_s3] sm:$0xff] %v194_v56  ;;  %v121_v59 = vadd.f32 %v120_v58, %v83_v57 }
  0x9c   :  { %v177_v60 = vpop.f32.mrf.mxu2 }
  0x9d   :  { %v187_v61 = vadd.f32 %v177_v60, %v121_v59 }
  0x9f   :  { %v195_v62 = vadd.f32 %v242_v53, %v187_v61  ;;  %v86_v63 = vpop.f32.mrf.mxu3 }
  0xa0   :  { %v123_v0 = vpop.f32.mrf.mxu1 }
  0xa1   :  { %199 = vst [vmem:[%s391_s3 + $0x8] sm:$0xff] %v195_v62  ;;  %v124_v1 = vadd.f32 %v123_v0, %v86_v63 }
  0xa4   :  { %v180_v2 = vpop.f32.mrf.mxu2 }
  0xa5   :  { %v188_v3 = vadd.f32 %v180_v2, %v124_v1 }
  0xa7   :  { %v196_v4 = vadd.f32 %v242_v53, %v188_v3  ;;  %v89_v5 = vpop.f32.mrf.mxu3 }
  0xa8   :  { %v126_v6 = vpop.f32.mrf.mxu1 }
  0xa9   :  { %200 = vst [vmem:[%s391_s3 + $0x10] sm:$0xff] %v196_v4  ;;  %v127_v7 = vadd.f32 %v126_v6, %v89_v5 }
  0xac   :  { %v183_v8 = vpop.f32.mrf.mxu2 }
  0xad   :  { %v189_v9 = vadd.f32 %v183_v8, %v127_v7 }
  0xaf   :  { %v197_v10 = vadd.f32 %v242_v53, %v189_v9 }
  0xb1   :  { %201 = vst [vmem:[%s391_s3 + $0x18] sm:$0xff] %v197_v10 }

</bundles_post_ra>
